<compile_context>
chip_gen: v6e
topology: v6e:2x2x1
jax: 0.10.0
libtpu: 0.0.40
codegen_flags: <defaults>
</compile_context>

<pallas_src>
import functools

import jax
import jax.numpy as jnp
from jax.experimental import pallas as pl
from jax.experimental.pallas import tpu as pltpu


def _env_step_kernel(actions_ref, w_ref, state_ref, *, num_bins):
    """One batched environment step; grid axis 0 is the batch dimension.

    actions_ref : (B, NA)       int32 SMEM (scalar prefetch) -- action bins
    w_ref       : (NUM_BINS, D) f32   VMEM (resident across grid steps)
    state_ref   : (NA, D)       f32   VMEM output block for batch element b
    """
    b = pl.program_id(0)
    na, _ = state_ref.shape

    # Row gather into vregs. Scalar index clamp lives on the scalar ALU
    # (2 free slots/cycle); the dynamic (1, D) slice is a plain vld.
    rows = []
    for i in range(na):  # NA == 8, fully unrolled
        idx = jnp.clip(actions_ref[b, i], 0, num_bins - 1)
        rows.append(w_ref[pl.ds(idx, 1), :])
    block = jnp.concatenate(rows, axis=0)          # (NA, D), vreg-resident

    # EUP tanh over the whole block, then a single dense unmasked store.
    state_ref[...] = jnp.tanh(block)


def _cast_tuple(t):
    return (t,) if not isinstance(t, tuple) else t


class BaseEnvironment:
    """JAX/Pallas counterpart of q_transformer.agent.BaseEnvironment."""

    def __init__(self, *, state_shape, text_embed_shape, num_action_bins=32):
        self.state_shape = tuple(state_shape)
        self.text_embed_shape = _cast_tuple(text_embed_shape)
        self.num_action_bins = int(num_action_bins)
        # `dummy` buffer equivalent (persistent=False, zeros(0)).
        self.dummy = jnp.zeros((0,), dtype=jnp.float32)

        assert len(self.state_shape) == 2, "this synthetic env uses a 2-D state"
        na, d = self.state_shape
        self._na, self._d = na, d

        # Deterministic parameter init (synthetic; no checkpoint load).
        key = jax.random.PRNGKey(0)
        self.w = jax.random.normal(key, (self.num_action_bins, d), dtype=jnp.float32) * 0.1

        num_bins = self.num_action_bins
        kernel = functools.partial(_env_step_kernel, num_bins=num_bins)

        def _batched_step(actions, w):
            # actions : (B, NA) int -> rewards (B,), next_states (B, NA, D), dones (B,)
            actions = jnp.asarray(actions, dtype=jnp.int32)
            bsz = actions.shape[0]
            next_states = pl.pallas_call(
                kernel,
                out_shape=jax.ShapeDtypeStruct((bsz, na, d), jnp.float32),
                grid_spec=pltpu.PrefetchScalarGridSpec(
                    num_scalar_prefetch=1,           # actions -> SMEM
                    grid=(bsz,),
                    in_specs=[
                        # W: same block every grid step -> stays resident in VMEM.
                        pl.BlockSpec((num_bins, d), lambda b, acts: (0, 0)),
                    ],
                    out_specs=pl.BlockSpec((None, na, d), lambda b, acts: (b, 0, 0)),
                ),
                compiler_params=pltpu.CompilerParams(
                    dimension_semantics=("parallel",),   # v7x: shard batch over 2 TCs
                ),
            )(actions, w)
            # Reward / done epilogue fuses here under jit (no lane-1 VMEM output).
            rewards = jnp.mean(next_states, axis=(1, 2))
            dones = rewards > jnp.float32(0.0)
            return rewards, next_states, dones

        self._batched_step = jax.jit(_batched_step)

    def init(self):
        # instruction string + initial state
        return "pick up the block", jnp.zeros(self.state_shape, dtype=jnp.float32)

    def __call__(self, actions):
        return self.forward(actions)

    def forward(self, actions):
        """Single env step: actions (NA,) -> (reward: f32[], next_state: (NA, D), done: bool[])."""
        acts = jnp.asarray(actions, dtype=jnp.int32).reshape(1, self._na)
        rewards, states, dones = self._batched_step(acts, self.w)
        return rewards[0], states[0], dones[0]

    def forward_batch(self, actions):
        """Batched env step: actions (B, NA) -> (rewards (B,), next_states (B, NA, D), dones (B,))."""
        acts = jnp.asarray(actions, dtype=jnp.int32).reshape(-1, self._na)
        return self._batched_step(acts, self.w)


if __name__ == "__main__":
    NA, D = 8, 128          # state_shape
    NUM_BINS = 32
    B = 4                   # small batch for the batched path

    env = BaseEnvironment(
        state_shape=(NA, D),
        text_embed_shape=512,
        num_action_bins=NUM_BINS,
    )

    key = jax.random.PRNGKey(0)
    k_single, k_batch = jax.random.split(key)
    actions = jax.random.randint(k_single, (NA,), 0, NUM_BINS, dtype=jnp.int32)
    batch_actions = jax.random.randint(k_batch, (B, NA), 0, NUM_BINS, dtype=jnp.int32)

    # --- single-step interface (matches BaseEnvironment.forward signature) ---
    reward, next_state, done = env(actions)
    jax.block_until_ready((reward, next_state, done))

    assert next_state.shape == (NA, D) and next_state.dtype == jnp.float32
    assert reward.shape == () and reward.dtype == jnp.float32
    assert done.shape == () and done.dtype == jnp.bool_

    ref_state = jnp.tanh(env.w[jnp.clip(actions, 0, NUM_BINS - 1)])
    assert jnp.allclose(next_state, ref_state, atol=1e-6)
    assert jnp.allclose(reward, jnp.mean(ref_state), atol=1e-6)

    # --- batched path (one pallas_call for B env steps) ---
    rewards, next_states, dones = env.forward_batch(batch_actions)
    jax.block_until_ready((rewards, next_states, dones))

    assert next_states.shape == (B, NA, D) and rewards.shape == (B,) and dones.shape == (B,)
    ref_states = jnp.tanh(env.w[jnp.clip(batch_actions, 0, NUM_BINS - 1)])
    assert jnp.allclose(next_states, ref_states, atol=1e-6)
    assert jnp.allclose(rewards, jnp.mean(ref_states, axis=(1, 2)), atol=1e-6)

    print("KERNEL_OK")
</pallas_src>

<mosaic_0001>
module attributes {stable_mosaic.version = 11 : i64} {
  func.func @_env_step_kernel(%arg0: i32, %arg1: memref<1x8xi32, #tpu.memory_space<smem>>, %arg2: memref<32x128xf32, #tpu.memory_space<vmem>>, %arg3: memref<1x8x128xf32, #tpu.memory_space<vmem>>) attributes {dimension_semantics = [#tpu.dimension_semantics<parallel>], iteration_bounds = array<i64: 1>, scalar_prefetch = 1 : i64, scratch_operands = 0 : i64, tpu.core_type = #tpu.core_type<tc>, window_params = [{pipeline_mode = #tpu.pipeline_mode<synchronous>, transform_indices = @transform_0, window_bounds = array<i64: 32, 128>}, {transform_indices = @transform_1, window_bounds = array<i64: 1, 8, 128>}]} {
    %0 = arith.index_cast %arg0 : i32 to index
    %c0 = arith.constant 0 : index
    %1 = memref.load %arg1[%0, %c0] : memref<1x8xi32, #tpu.memory_space<smem>>
    %c0_i32 = arith.constant 0 : i32
    %c31_i32 = arith.constant 31 : i32
    %2 = arith.maxsi %c0_i32, %1 : i32
    %3 = arith.minsi %c31_i32, %2 : i32
    %4 = arith.index_cast %3 : i32 to index
    %c0_0 = arith.constant 0 : index
    %5 = vector.load %arg2[%4, %c0_0] : memref<32x128xf32, #tpu.memory_space<vmem>>, vector<1x128xf32>
    %6 = arith.index_cast %arg0 : i32 to index
    %c1 = arith.constant 1 : index
    %7 = memref.load %arg1[%6, %c1] : memref<1x8xi32, #tpu.memory_space<smem>>
    %c0_i32_1 = arith.constant 0 : i32
    %c31_i32_2 = arith.constant 31 : i32
    %8 = arith.maxsi %c0_i32_1, %7 : i32
    %9 = arith.minsi %c31_i32_2, %8 : i32
    %10 = arith.index_cast %9 : i32 to index
    %c0_3 = arith.constant 0 : index
    %11 = vector.load %arg2[%10, %c0_3] : memref<32x128xf32, #tpu.memory_space<vmem>>, vector<1x128xf32>
    %12 = arith.index_cast %arg0 : i32 to index
    %c2 = arith.constant 2 : index
    %13 = memref.load %arg1[%12, %c2] : memref<1x8xi32, #tpu.memory_space<smem>>
    %c0_i32_4 = arith.constant 0 : i32
    %c31_i32_5 = arith.constant 31 : i32
    %14 = arith.maxsi %c0_i32_4, %13 : i32
    %15 = arith.minsi %c31_i32_5, %14 : i32
    %16 = arith.index_cast %15 : i32 to index
    %c0_6 = arith.constant 0 : index
    %17 = vector.load %arg2[%16, %c0_6] : memref<32x128xf32, #tpu.memory_space<vmem>>, vector<1x128xf32>
    %18 = arith.index_cast %arg0 : i32 to index
    %c3 = arith.constant 3 : index
    %19 = memref.load %arg1[%18, %c3] : memref<1x8xi32, #tpu.memory_space<smem>>
    %c0_i32_7 = arith.constant 0 : i32
    %c31_i32_8 = arith.constant 31 : i32
    %20 = arith.maxsi %c0_i32_7, %19 : i32
    %21 = arith.minsi %c31_i32_8, %20 : i32
    %22 = arith.index_cast %21 : i32 to index
    %c0_9 = arith.constant 0 : index
    %23 = vector.load %arg2[%22, %c0_9] : memref<32x128xf32, #tpu.memory_space<vmem>>, vector<1x128xf32>
    %24 = arith.index_cast %arg0 : i32 to index
    %c4 = arith.constant 4 : index
    %25 = memref.load %arg1[%24, %c4] : memref<1x8xi32, #tpu.memory_space<smem>>
    %c0_i32_10 = arith.constant 0 : i32
    %c31_i32_11 = arith.constant 31 : i32
    %26 = arith.maxsi %c0_i32_10, %25 : i32
    %27 = arith.minsi %c31_i32_11, %26 : i32
    %28 = arith.index_cast %27 : i32 to index
    %c0_12 = arith.constant 0 : index
    %29 = vector.load %arg2[%28, %c0_12] : memref<32x128xf32, #tpu.memory_space<vmem>>, vector<1x128xf32>
    %30 = arith.index_cast %arg0 : i32 to index
    %c5 = arith.constant 5 : index
    %31 = memref.load %arg1[%30, %c5] : memref<1x8xi32, #tpu.memory_space<smem>>
    %c0_i32_13 = arith.constant 0 : i32
    %c31_i32_14 = arith.constant 31 : i32
    %32 = arith.maxsi %c0_i32_13, %31 : i32
    %33 = arith.minsi %c31_i32_14, %32 : i32
    %34 = arith.index_cast %33 : i32 to index
    %c0_15 = arith.constant 0 : index
    %35 = vector.load %arg2[%34, %c0_15] : memref<32x128xf32, #tpu.memory_space<vmem>>, vector<1x128xf32>
    %36 = arith.index_cast %arg0 : i32 to index
    %c6 = arith.constant 6 : index
    %37 = memref.load %arg1[%36, %c6] : memref<1x8xi32, #tpu.memory_space<smem>>
    %c0_i32_16 = arith.constant 0 : i32
    %c31_i32_17 = arith.constant 31 : i32
    %38 = arith.maxsi %c0_i32_16, %37 : i32
    %39 = arith.minsi %c31_i32_17, %38 : i32
    %40 = arith.index_cast %39 : i32 to index
    %c0_18 = arith.constant 0 : index
    %41 = vector.load %arg2[%40, %c0_18] : memref<32x128xf32, #tpu.memory_space<vmem>>, vector<1x128xf32>
    %42 = arith.index_cast %arg0 : i32 to index
    %c7 = arith.constant 7 : index
    %43 = memref.load %arg1[%42, %c7] : memref<1x8xi32, #tpu.memory_space<smem>>
    %c0_i32_19 = arith.constant 0 : i32
    %c31_i32_20 = arith.constant 31 : i32
    %44 = arith.maxsi %c0_i32_19, %43 : i32
    %45 = arith.minsi %c31_i32_20, %44 : i32
    %46 = arith.index_cast %45 : i32 to index
    %c0_21 = arith.constant 0 : index
    %47 = vector.load %arg2[%46, %c0_21] : memref<32x128xf32, #tpu.memory_space<vmem>>, vector<1x128xf32>
    %48 = tpu.concatenate %5, %11, %17, %23, %29, %35, %41, %47 in 0 : vector<1x128xf32>, vector<1x128xf32>, vector<1x128xf32>, vector<1x128xf32>, vector<1x128xf32>, vector<1x128xf32>, vector<1x128xf32>, vector<1x128xf32> -> vector<8x128xf32>
    %49 = math.tanh %48 : vector<8x128xf32>
    %c0_22 = arith.constant 0 : index
    %c0_23 = arith.constant 0 : index
    %c0_24 = arith.constant 0 : index
    %50 = vector.load %arg3[%c0_22, %c0_23, %c0_24] : memref<1x8x128xf32, #tpu.memory_space<vmem>>, vector<1x8x128xf32>
    %51 = vector.shape_cast %50 : vector<1x8x128xf32> to vector<8x128xf32>
    %52 = vector.shape_cast %49 : vector<8x128xf32> to vector<1x8x128xf32>
    tpu.vector_store %arg3[%c0_22, %c0_23, %c0_24], %52 {strides = array<i32>} : memref<1x8x128xf32, #tpu.memory_space<vmem>>, vector<1x8x128xf32>,
    return
  }
  func.func @transform_0(%arg0: i32, %arg1: memref<1x8xi32, #tpu.memory_space<smem>>) -> (i32, i32) {
    %c0_i32 = arith.constant 0 : i32
    %c0_i32_0 = arith.constant 0 : i32
    %c0_i32_1 = arith.constant 0 : i32
    return %c0_i32, %c0_i32_0 : i32, i32
  }
  func.func @transform_1(%arg0: i32, %arg1: memref<1x8xi32, #tpu.memory_space<smem>>) -> (i32, i32, i32) {
    %c0_i32 = arith.constant 0 : i32
    %c0_i32_0 = arith.constant 0 : i32
    %c0_i32_1 = arith.constant 0 : i32
    return %arg0, %c0_i32, %c0_i32_0 : i32, i32, i32
  }
}

</mosaic_0001>

<bundles_post_ra>
// kernel: _batched_step.1
= control target key start
LH: loop header
LB: loop body
LE: loop exit
PB: predicated region body
PF: predicated region fallthrough
CT: control target
= control target key end

     0   :  { %s242_s9 = smov [#allocation3]   ;;  %s280_s0 = inlined_call_operand.hbm [shape: s32[1,8], index: 0, kind: input, shape index: {}]   ;;  %s281_s1 = inlined_call_operand.hbm [shape: f32[32,128], index: 1, kind: input, shape index: {}]   ;;  %s282_s2 = inlined_call_operand.vmem [shape: f32[1,8,128], index: 2, kind: output, shape index: {}]  }
   0x1   :  { %8 = dma.hbm_to_smem %s280_s0, 16, %s242_s9, [#allocation2] }
   0x2   :  { %238 = dma.done.wait [#allocation2], 16 }
   0x3   :  { %239 = vsyncadd [#allocation2], 4294967280 }
   0x4   :  { %10 = sfence }
   0x5   :  { %11 = vsyncpa [#allocation5], 0  ;;  %s243_s12 = smov [#allocation4]  }
   0x6   :  { %s17_s13 = sshll.u32 %s243_s12, 4  ;;  %s18_s13 = int_to_ptr.vmem [resolvable:$true] %s17_s13 }
   0x7   :  { %s226_s14 = scalar_lea.vmem %s18_s13, 512  ;;  %p231_p1 = scmp.lt.s32.totalorder %s18_s13, %s18_s13 }
   0x8   :  { %p227_p0 = scmp.ne.s32.totalorder %s18_s13, %s226_s14  ;;  %p232_p2 = scmp.lt.s32.totalorder %s226_s14, %s226_s14 }
   0xa   :  { %p233_p3 = por %p232_p2, %p231_p1 }
   0xc   :  { %p234_p4 = pnand %p233_p3, %p227_p0 }
   0xe   :  { %237 = shalt.err (!%p234_p4)
}
   0xf   :  { %s244_s15 = smov 128   ;;  %s245_s16 = smov 8  }
  0x10   :  { %23 = dma.hbm_to_vmem [thread:$0]  %s281_s1, 512, %s18_s13, [#allocation5], %s244_s15, %s244_s15, %s245_s16  }
  0x11   :  { %240 = dma.done.wait [#allocation5], 512  }
  0x12   :  { %241 = vsyncadd [#allocation5], 4294966784  ;;  %s28_s0 = sld [smem:[#allocation3]]  ;;  %vm112_vm0 = vcmask 1040384   ;;  %vm114_vm1 = vcmask 1041408   ;;  %vm116_vm2 = vcmask 1042432  }
  0x13   :  { %s146_s19 = sld [smem:[#allocation3 + $0x1]]  ;;  %vm118_vm3 = vcmask 1043456   ;;  %vm120_vm4 = vcmask 1044480   ;;  %vm122_vm5 = vcmask 1045504   ;;  %vm124_vm6 = vcmask 1046528  }
  0x14   :  { %s152_s20 = sld [smem:[#allocation3 + $0x2]] }
  0x15   :  { %s158_s21 = sld [smem:[#allocation3 + $0x3]] }
  0x16   :  { %s267_s22 = sld [smem:[#allocation3 + $0x4]] }
  0x17   :  { %s269_s23 = sld [smem:[#allocation3 + $0x5]] }
  0x18   :  { %p29_p5 = scmp.gt.s32.totalorder %s28_s0, 0  ;;  %p141_p6 = scmp.lt.s32.totalorder %s28_s0, 31 }
  0x19   :  { %p37_p7 = scmp.gt.s32.totalorder %s146_s19, 0  ;;  %p147_p8 = scmp.lt.s32.totalorder %s146_s19, 31 }
  0x1a   :  { %s284_s0 = smov (!%p29_p5, %s28_s0), 0  ;;  %p45_p9 = scmp.gt.s32.totalorder %s152_s20, 0 }
  0x1b   :  { %s286_s19 = smov (!%p37_p7, %s146_s19), 0  ;;  %s288_s0 = smov (!%p141_p6, %s284_s0), 31 }
  0x1c   :  { %s290_s19 = smov (!%p147_p8, %s286_s19), 31  ;;  %p153_p10 = scmp.lt.s32.totalorder %s152_s20, 31 }
  0x1d   :  { %s292_s20 = smov (!%p45_p9, %s152_s20), 0  ;;  %p53_p11 = scmp.gt.s32.totalorder %s158_s21, 0 }
  0x1e   :  { %p159_p12 = scmp.lt.s32.totalorder %s158_s21, 31  ;;  %s294_s20 = smov (!%p153_p10, %s292_s20), 31 }
  0x1f   :  { %s296_s21 = smov (!%p53_p11, %s158_s21), 0  ;;  %p61_p13 = scmp.gt.s32.totalorder %s267_s22, 0 }
  0x20   :  { %s41_s1 = scalar_lea.vmem [#allocation4], %s290_s19  ;;  %s298_s21 = smov (!%p159_p12, %s296_s21), 31 }
  0x21   :  { %v42_v0 = vld [vmem:[%s41_s1] sm:$0x1]  ;;  %s62_s24 = scalar_select %p61_p13, %s267_s22, 0 }
  0x22   :  { %p165_p0 = scmp.lt.s32.totalorder %s267_s22, 31  ;;  %s49_s25 = scalar_lea.vmem [#allocation4], %s294_s20  ;;  %v92_v2 = vrot.slane %v42_v0, 7 }
  0x23   :  { %v50_v1 = vld [vmem:[%s49_s25] sm:$0x1]  ;;  %p69_p1 = scmp.gt.s32.totalorder %s269_s23, 0  ;;  %p171_p2 = scmp.lt.s32.totalorder %s269_s23, 31 }
  0x24   :  { %s33_s26 = scalar_lea.vmem [#allocation4], %s288_s0  ;;  %s300_s24 = smov (!%p165_p0, %s62_s24), 31  ;;  %v95_v5 = vrot.slane %v50_v1, 6 }
  0x25   :  { %v34_v3 = vld [vmem:[%s33_s26] sm:$0x1]  ;;  %s302_s23 = smov (!%p69_p1, %s269_s23), 0  ;;  %s57_s27 = scalar_lea.vmem [#allocation4], %s298_s21 }
  0x26   :  { %v58_v4 = vld [vmem:[%s57_s27] sm:$0x1]  ;;  %s176_s28 = sld [smem:[#allocation3 + $0x6]]  ;;  %s304_s23 = smov (!%p171_p2, %s302_s23), 31  ;;  %v113_v6 = vsel %vm112_vm0, %v34_v3, %v92_v2 }
  0x27   :  { %s182_s29 = sld [smem:[#allocation3 + $0x7]]  ;;  %s65_s30 = scalar_lea.vmem [#allocation4], %s300_s24  ;;  %v98_v8 = vrot.slane %v58_v4, 5  ;;  %v115_v9 = vsel %vm114_vm1, %v113_v6, %v95_v5 }
  0x28   :  { %v66_v7 = vld [vmem:[%s65_s30] sm:$0x1]  ;;  %s73_s3 = scalar_lea.vmem [#allocation4], %s304_s23 }
  0x29   :  { %v74_v10 = vld [vmem:[%s73_s3] sm:$0x1]  ;;  %v101_v11 = vrot.slane %v66_v7, 4  ;;  %v117_v12 = vsel %vm116_vm2, %v115_v9, %v98_v8 }
  0x2a   :  { %v104_v13 = vrot.slane %v74_v10, 3 }
  0x2b   :  { %v119_v14 = vsel %vm118_vm3, %v117_v12, %v101_v11 }
  0x2c   :  { %p77_p3 = scmp.gt.s32.totalorder %s176_s28, 0  ;;  %p177_p4 = scmp.lt.s32.totalorder %s176_s28, 31  ;;  %v121_v16 = vsel %vm120_vm4, %v119_v14, %v104_v13 }
  0x2d   :  { %p85_p5 = scmp.gt.s32.totalorder %s182_s29, 0  ;;  %p183_p6 = scmp.lt.s32.totalorder %s182_s29, 31 }
  0x2e   :  { %s306_s28 = smov (!%p77_p3, %s176_s28), 0 }
  0x2f   :  { %s308_s28 = smov (!%p177_p4, %s306_s28), 31  ;;  %s310_s29 = smov (!%p85_p5, %s182_s29), 0 }
  0x30   :  { %s81_s4 = scalar_lea.vmem [#allocation4], %s308_s28  ;;  %s312_s29 = smov (!%p183_p6, %s310_s29), 31 }
  0x31   :  { %v82_v15 = vld [vmem:[%s81_s4] sm:$0x1]  ;;  %s89_s5 = scalar_lea.vmem [#allocation4], %s312_s29 }
  0x32   :  { %v107_v17 = vrot.slane %v82_v15, 2  ;;  %v90_v18 = vld [vmem:[%s89_s5] sm:$0x1] }
  0x33   :  { %v110_v20 = vrot.slane %v90_v18, 1 }
  0x34   :  { %v123_v19 = vsel %vm122_vm5, %v121_v16, %v107_v17 }
  0x35   :  { %v125_v21 = vsel %vm124_vm6, %v123_v19, %v110_v20 }
  0x36   :  { %208 = vtanh.f32 %v125_v21 }
  0x43   :  { %v209_v22 = vpop.eup %208 }
  0x44   :  { %127 = vst [vmem:[%s282_s2] sm:$0xff] %v209_v22 }
  0x45   :  { %132 = vsyncpa [#allocation5], 1 }

</bundles_post_ra>
